<compile_context>
chip_gen: v5e
topology: v5e:2x2
jax: 0.10.0
libtpu: 0.0.40
codegen_flags: <defaults>
</compile_context>

<pallas_src>
import functools

import jax
import jax.numpy as jnp
import numpy as np
from jax.experimental import pallas as pl
from jax.experimental.pallas import tpu as pltpu

_LANES = 128


def _round_up(x, m):
    return ((x + m - 1) // m) * m


def _device_kind():
    try:
        return jax.devices()[0].device_kind.lower()
    except Exception:  # pragma: no cover - defensive; backend is TPU per contract
        return ""


def _jde_kernel(off_ref, p_ref, io_ref, *, na, no, two_stride, cw, ch):
    # off_ref block: (2, rows, 128) f32   -- pre-folded (g{x,y} - 0.5) * stride
    # p_ref / io_ref block: (na, no, rows, 128)
    offx = off_ref[0]                      # (rows, 128)
    offy = off_ref[1]                      # (rows, 128)
    sig = jax.nn.sigmoid

    # Box regression: xy / wh per anchor; direct full-tile stores per plane.
    for a in range(na):
        px = p_ref[a, 0].astype(jnp.float32)
        py = p_ref[a, 1].astype(jnp.float32)
        pw = p_ref[a, 2].astype(jnp.float32)
        ph = p_ref[a, 3].astype(jnp.float32)
        io_ref[a, 0] = sig(px) * two_stride + offx
        io_ref[a, 1] = sig(py) * two_stride + offy
        sw = sig(pw)
        sh = sig(ph)
        io_ref[a, 2] = sw * sw * cw[a]     # (2*sig)^2 * (anchor/stride) * stride
        io_ref[a, 3] = sh * sh * ch[a]

    # F.softmax with implicit dim on the 5-D tensor io[..., 4:] -> dim=1, i.e.
    # softmax across the ANCHOR axis, per channel, per spatial position.
    # (Static unroll is fine at na=3 / no=6; for much larger heads this should be
    #  restructured as a fori_loop to bound vreg live ranges.)
    for c in range(4, no):
        logits = [p_ref[a, c].astype(jnp.float32) for a in range(na)]
        m = logits[0]
        for a in range(1, na):
            m = jnp.maximum(m, logits[a])
        es = [jnp.exp(x - m) for x in logits]
        den = es[0]
        for a in range(1, na):
            den = den + es[a]
        # EUP approx reciprocal + one Newton step -> near-exact f32, VALU is free
        # in this HBM-bound kernel.
        inv = pl.reciprocal(den, approx=True)
        inv = inv * (2.0 - den * inv)
        for a in range(na):
            io_ref[a, c] = es[a] * inv


def jde_forward(p_nchw, anchors, stride, *, tile_rows=None,
                channel_major_io=False, return_p=True):
    """JDELayer.forward (eval / non-ONNX path).

    Default return matches the PyTorch module:
        (io (bs, na*ny*nx, no), p permuted to (bs, na, ny, nx, no)).
    Set channel_major_io=True to get io as (bs, na, no, S) (kernel-native, no
    extra HBM transpose pass); set return_p=False to skip the p permute pass.
    """
    anchors = np.asarray(anchors, dtype=np.float32)
    na = anchors.shape[0]
    bs, c, ny, nx = p_nchw.shape
    no = c // na
    assert na * no == c, "channel dim must equal na * no"
    S = ny * nx

    kind = _device_kind()
    is_v7 = ("v7" in kind) or ("tpu7" in kind)
    if tile_rows is None:
        tile_rows = 512 if is_v7 else 256   # larger tiles amortize step overhead
                                            # against v7x's ~3.2 TB/s HBM

    # --- adaptive spatial tiling: lane-dense (rows, 128), minimal padding ---
    Sr = pl.cdiv(S, _LANES)                 # rows of 128 lanes covering S
    num_tiles = pl.cdiv(Sr, tile_rows)
    if is_v7 and bs * num_tiles < 2 and Sr >= 16:
        num_tiles = 2                       # give both v7x TensorCores a grid step
    if num_tiles == 1:
        tr = Sr                             # full-extent block (no 8-row rounding)
    else:
        tr = _round_up(pl.cdiv(Sr, num_tiles), 8)   # sublane-aligned tile
    Sr_pad = num_tiles * tr
    Sp = Sr_pad * _LANES

    p4 = p_nchw.reshape(bs, na, no, S)      # contiguous view, no copy
    if Sp != S:
        # TODO(synk): ragged spatial tail — with adaptive tiling the pad is tiny
        # (< 8 rows/tile) but XLA still materializes one copy of the input; fold
        # into the producer or handle the tail in-kernel if this ever dominates.
        p4 = jnp.pad(p4, ((0, 0), (0, 0), (0, 0), (0, Sp - S)))
    p5 = p4.reshape(bs, na, no, Sr_pad, _LANES)

    # Pre-folded grid offsets: (gx - 0.5) * stride, (gy - 0.5) * stride.
    idx = np.arange(Sp, dtype=np.int64)
    gx = (idx % nx).astype(np.float32)
    gy = (idx // nx).astype(np.float32)
    offs = np.stack([(gx - 0.5) * float(stride), (gy - 0.5) * float(stride)],
                    axis=0).reshape(2, Sr_pad, _LANES)
    offs = jnp.asarray(offs, dtype=jnp.float32)

    # Compile-time anchor constants: (sig*2)^2 * (anchor/stride) * stride == 4*sig^2*anchor
    cw = tuple(float(4.0 * anchors[a, 0]) for a in range(na))
    ch = tuple(float(4.0 * anchors[a, 1]) for a in range(na))

    kernel = functools.partial(_jde_kernel, na=na, no=no,
                               two_stride=float(2.0 * stride), cw=cw, ch=ch)

    # VMEM budget from the actual double-buffered block footprint (+ margin),
    # never below 32 MiB so larger tiles don't trip the per-chip scoped default.
    blk = na * no * tr * _LANES
    in_bytes = blk * np.dtype(p_nchw.dtype).itemsize
    out_bytes = blk * 4
    off_bytes = 2 * tr * _LANES * 4
    vmem_limit = int(max(2 * (in_bytes + out_bytes + off_bytes) + (4 << 20),
                         32 << 20))

    io5 = pl.pallas_call(
        kernel,
        out_shape=jax.ShapeDtypeStruct((bs, na, no, Sr_pad, _LANES), jnp.float32),
        # batch innermost: the offs block index is constant across consecutive
        # steps, so its tile is not re-fetched per batch element.
        grid=(num_tiles, bs),
        in_specs=[
            pl.BlockSpec((2, tr, _LANES), lambda s, b: (0, s, 0)),
            pl.BlockSpec((None, na, no, tr, _LANES), lambda s, b: (b, 0, 0, s, 0)),
        ],
        out_specs=pl.BlockSpec((None, na, no, tr, _LANES),
                               lambda s, b: (b, 0, 0, s, 0)),
        compiler_params=pltpu.CompilerParams(
            dimension_semantics=("parallel", "parallel"),
            vmem_limit_bytes=vmem_limit),
    )(offs, p5)

    # Glue back to the module's output layouts (kept in the wrapper so kernel
    # stores stay lane-dense; both permutes are optional for consumers that can
    # take the channel-major layouts directly).
    io = io5.reshape(bs, na, no, Sp)
    if Sp != S:
        io = io[..., :S]                                  # drop spatial pad
    if not channel_major_io:
        io = io.transpose(0, 1, 3, 2).reshape(bs, na * S, no)

    p_out = None
    if return_p:
        p_out = p_nchw.reshape(bs, na, no, ny, nx).transpose(0, 1, 3, 4, 2)
    return io, p_out


def jde_reference(p_nchw, anchors, stride):
    """Pure-JAX reference mirroring the PyTorch code for validation."""
    anchors = jnp.asarray(anchors, dtype=jnp.float32)
    na = anchors.shape[0]
    bs, c, ny, nx = p_nchw.shape
    no = c // na
    p = p_nchw.reshape(bs, na, no, ny, nx).transpose(0, 1, 3, 4, 2).astype(jnp.float32)
    yv, xv = jnp.meshgrid(jnp.arange(ny), jnp.arange(nx), indexing="ij")
    grid = jnp.stack((xv, yv), 2).reshape(1, 1, ny, nx, 2).astype(jnp.float32)
    anchor_wh = (anchors / float(stride)).reshape(1, na, 1, 1, 2)
    xy = (jax.nn.sigmoid(p[..., :2]) * 2.0 - 0.5 + grid) * stride
    wh = (jax.nn.sigmoid(p[..., 2:4]) * 2.0) ** 2 * anchor_wh * stride
    rest = jax.nn.softmax(p[..., 4:], axis=1)   # implicit dim=1 (anchor axis)
    io = jnp.concatenate([xy, wh, rest], axis=-1)
    return io.reshape(bs, -1, no), p_nchw.reshape(bs, na, no, ny, nx).transpose(0, 1, 3, 4, 2)


# TODO(synk): ASFF branch (F.interpolate bilinear) and ONNX_EXPORT branch are dead
# code in this forward (ASFF=False, ONNX_EXPORT=False) and are not implemented.

if __name__ == "__main__":
    # Module config (deterministic, in-script): 3 anchors, nc=1 -> no=6, stride=8.
    anchors = np.array([[10.0, 13.0], [16.0, 30.0], [33.0, 23.0]], dtype=np.float32)
    nc = 1
    stride = 8
    na = anchors.shape[0]
    no = nc + 5

    bs, ny, nx = 2, 16, 16
    key = jax.random.PRNGKey(0)
    p_in = jax.random.normal(key, (bs, na * no, ny, nx), dtype=jnp.float32)

    io, p_perm = jde_forward(p_in, anchors, stride)
    io = jax.block_until_ready(io)
    p_perm = jax.block_until_ready(p_perm)

    io_ref, p_ref = jde_reference(p_in, anchors, stride)
    np.testing.assert_allclose(np.asarray(io), np.asarray(io_ref), rtol=2e-3, atol=2e-3)
    np.testing.assert_allclose(np.asarray(p_perm), np.asarray(p_ref), rtol=1e-6, atol=1e-6)
    assert io.shape == (bs, na * ny * nx, no)
    assert p_perm.shape == (bs, na, ny, nx, no)

    # Also exercise the kernel-native (no extra transpose pass) output path.
    io_raw, _ = jde_forward(p_in, anchors, stride, channel_major_io=True,
                            return_p=False)
    io_raw = jax.block_until_ready(io_raw)
    assert io_raw.shape == (bs, na, no, ny * nx)

    print("KERNEL_OK")
</pallas_src>

<mosaic_0001>
module attributes {stable_mosaic.version = 11 : i64} {
  func.func @_jde_kernel(%arg0: i32, %arg1: i32, %arg2: memref<2x2x128xf32, #tpu.memory_space<vmem>>, %arg3: memref<1x3x6x2x128xf32, #tpu.memory_space<vmem>>, %arg4: memref<1x3x6x2x128xf32, #tpu.memory_space<vmem>>) attributes {dimension_semantics = [#tpu.dimension_semantics<parallel>, #tpu.dimension_semantics<parallel>], iteration_bounds = array<i64: 1, 2>, scalar_prefetch = 0 : i64, scratch_operands = 0 : i64, tpu.core_type = #tpu.core_type<tc>, window_params = [{transform_indices = @transform_0, window_bounds = array<i64: 2, 2, 128>}, {transform_indices = @transform_1, window_bounds = array<i64: 1, 3, 6, 2, 128>}, {transform_indices = @transform_2, window_bounds = array<i64: 1, 3, 6, 2, 128>}]} {
    %c0 = arith.constant 0 : index
    %c0_0 = arith.constant 0 : index
    %c0_1 = arith.constant 0 : index
    %0 = vector.load %arg2[%c0, %c0_0, %c0_1] : memref<2x2x128xf32, #tpu.memory_space<vmem>>, vector<1x2x128xf32>
    %1 = vector.shape_cast %0 : vector<1x2x128xf32> to vector<2x128xf32>
    %c1 = arith.constant 1 : index
    %c0_2 = arith.constant 0 : index
    %c0_3 = arith.constant 0 : index
    %2 = vector.load %arg2[%c1, %c0_2, %c0_3] : memref<2x2x128xf32, #tpu.memory_space<vmem>>, vector<1x2x128xf32>
    %3 = vector.shape_cast %2 : vector<1x2x128xf32> to vector<2x128xf32>
    %c0_4 = arith.constant 0 : index
    %c0_5 = arith.constant 0 : index
    %c0_6 = arith.constant 0 : index
    %c0_7 = arith.constant 0 : index
    %c0_8 = arith.constant 0 : index
    %4 = vector.load %arg3[%c0_4, %c0_5, %c0_6, %c0_7, %c0_8] : memref<1x3x6x2x128xf32, #tpu.memory_space<vmem>>, vector<1x1x1x2x128xf32>
    %5 = vector.shape_cast %4 : vector<1x1x1x2x128xf32> to vector<2x128xf32>
    %c0_9 = arith.constant 0 : index
    %c0_10 = arith.constant 0 : index
    %c1_11 = arith.constant 1 : index
    %c0_12 = arith.constant 0 : index
    %c0_13 = arith.constant 0 : index
    %6 = vector.load %arg3[%c0_9, %c0_10, %c1_11, %c0_12, %c0_13] : memref<1x3x6x2x128xf32, #tpu.memory_space<vmem>>, vector<1x1x1x2x128xf32>
    %7 = vector.shape_cast %6 : vector<1x1x1x2x128xf32> to vector<2x128xf32>
    %c0_14 = arith.constant 0 : index
    %c0_15 = arith.constant 0 : index
    %c2 = arith.constant 2 : index
    %c0_16 = arith.constant 0 : index
    %c0_17 = arith.constant 0 : index
    %8 = vector.load %arg3[%c0_14, %c0_15, %c2, %c0_16, %c0_17] : memref<1x3x6x2x128xf32, #tpu.memory_space<vmem>>, vector<1x1x1x2x128xf32>
    %9 = vector.shape_cast %8 : vector<1x1x1x2x128xf32> to vector<2x128xf32>
    %c0_18 = arith.constant 0 : index
    %c0_19 = arith.constant 0 : index
    %c3 = arith.constant 3 : index
    %c0_20 = arith.constant 0 : index
    %c0_21 = arith.constant 0 : index
    %10 = vector.load %arg3[%c0_18, %c0_19, %c3, %c0_20, %c0_21] : memref<1x3x6x2x128xf32, #tpu.memory_space<vmem>>, vector<1x1x1x2x128xf32>
    %11 = vector.shape_cast %10 : vector<1x1x1x2x128xf32> to vector<2x128xf32>
    %12 = arith.negf %5 : vector<2x128xf32>
    %13 = math.exp %12 : vector<2x128xf32>
    %cst = arith.constant 1.000000e+00 : f32
    %14 = vector.broadcast %cst : f32 to vector<2x128xf32>
    %15 = arith.addf %14, %13 : vector<2x128xf32>
    %16 = arith.divf %14, %15 : vector<2x128xf32>
    %cst_22 = arith.constant 1.600000e+01 : f32
    %17 = vector.broadcast %cst_22 : f32 to vector<2x128xf32>
    %18 = arith.mulf %16, %17 : vector<2x128xf32>
    %19 = arith.addf %18, %1 : vector<2x128xf32>
    %c0_23 = arith.constant 0 : index
    %c0_24 = arith.constant 0 : index
    %c0_25 = arith.constant 0 : index
    %c0_26 = arith.constant 0 : index
    %c0_27 = arith.constant 0 : index
    %20 = vector.load %arg4[%c0_23, %c0_24, %c0_25, %c0_26, %c0_27] : memref<1x3x6x2x128xf32, #tpu.memory_space<vmem>>, vector<1x1x1x2x128xf32>
    %21 = vector.shape_cast %20 : vector<1x1x1x2x128xf32> to vector<2x128xf32>
    %22 = vector.shape_cast %19 : vector<2x128xf32> to vector<1x1x1x2x128xf32>
    tpu.vector_store %arg4[%c0_23, %c0_24, %c0_25, %c0_26, %c0_27], %22 {strides = array<i32>} : memref<1x3x6x2x128xf32, #tpu.memory_space<vmem>>, vector<1x1x1x2x128xf32>,
    %23 = arith.negf %7 : vector<2x128xf32>
    %24 = math.exp %23 : vector<2x128xf32>
    %cst_28 = arith.constant 1.000000e+00 : f32
    %25 = vector.broadcast %cst_28 : f32 to vector<2x128xf32>
    %26 = arith.addf %25, %24 : vector<2x128xf32>
    %27 = arith.divf %25, %26 : vector<2x128xf32>
    %cst_29 = arith.constant 1.600000e+01 : f32
    %28 = vector.broadcast %cst_29 : f32 to vector<2x128xf32>
    %29 = arith.mulf %27, %28 : vector<2x128xf32>
    %30 = arith.addf %29, %3 : vector<2x128xf32>
    %c0_30 = arith.constant 0 : index
    %c0_31 = arith.constant 0 : index
    %c1_32 = arith.constant 1 : index
    %c0_33 = arith.constant 0 : index
    %c0_34 = arith.constant 0 : index
    %31 = vector.load %arg4[%c0_30, %c0_31, %c1_32, %c0_33, %c0_34] : memref<1x3x6x2x128xf32, #tpu.memory_space<vmem>>, vector<1x1x1x2x128xf32>
    %32 = vector.shape_cast %31 : vector<1x1x1x2x128xf32> to vector<2x128xf32>
    %33 = vector.shape_cast %30 : vector<2x128xf32> to vector<1x1x1x2x128xf32>
    tpu.vector_store %arg4[%c0_30, %c0_31, %c1_32, %c0_33, %c0_34], %33 {strides = array<i32>} : memref<1x3x6x2x128xf32, #tpu.memory_space<vmem>>, vector<1x1x1x2x128xf32>,
    %34 = arith.negf %9 : vector<2x128xf32>
    %35 = math.exp %34 : vector<2x128xf32>
    %cst_35 = arith.constant 1.000000e+00 : f32
    %36 = vector.broadcast %cst_35 : f32 to vector<2x128xf32>
    %37 = arith.addf %36, %35 : vector<2x128xf32>
    %38 = arith.divf %36, %37 : vector<2x128xf32>
    %39 = arith.negf %11 : vector<2x128xf32>
    %40 = math.exp %39 : vector<2x128xf32>
    %cst_36 = arith.constant 1.000000e+00 : f32
    %41 = vector.broadcast %cst_36 : f32 to vector<2x128xf32>
    %42 = arith.addf %41, %40 : vector<2x128xf32>
    %43 = arith.divf %41, %42 : vector<2x128xf32>
    %44 = arith.mulf %38, %38 : vector<2x128xf32>
    %cst_37 = arith.constant 4.000000e+01 : f32
    %45 = vector.broadcast %cst_37 : f32 to vector<2x128xf32>
    %46 = arith.mulf %44, %45 : vector<2x128xf32>
    %c0_38 = arith.constant 0 : index
    %c0_39 = arith.constant 0 : index
    %c2_40 = arith.constant 2 : index
    %c0_41 = arith.constant 0 : index
    %c0_42 = arith.constant 0 : index
    %47 = vector.load %arg4[%c0_38, %c0_39, %c2_40, %c0_41, %c0_42] : memref<1x3x6x2x128xf32, #tpu.memory_space<vmem>>, vector<1x1x1x2x128xf32>
    %48 = vector.shape_cast %47 : vector<1x1x1x2x128xf32> to vector<2x128xf32>
    %49 = vector.shape_cast %46 : vector<2x128xf32> to vector<1x1x1x2x128xf32>
    tpu.vector_store %arg4[%c0_38, %c0_39, %c2_40, %c0_41, %c0_42], %49 {strides = array<i32>} : memref<1x3x6x2x128xf32, #tpu.memory_space<vmem>>, vector<1x1x1x2x128xf32>,
    %50 = arith.mulf %43, %43 : vector<2x128xf32>
    %cst_43 = arith.constant 5.200000e+01 : f32
    %51 = vector.broadcast %cst_43 : f32 to vector<2x128xf32>
    %52 = arith.mulf %50, %51 : vector<2x128xf32>
    %c0_44 = arith.constant 0 : index
    %c0_45 = arith.constant 0 : index
    %c3_46 = arith.constant 3 : index
    %c0_47 = arith.constant 0 : index
    %c0_48 = arith.constant 0 : index
    %53 = vector.load %arg4[%c0_44, %c0_45, %c3_46, %c0_47, %c0_48] : memref<1x3x6x2x128xf32, #tpu.memory_space<vmem>>, vector<1x1x1x2x128xf32>
    %54 = vector.shape_cast %53 : vector<1x1x1x2x128xf32> to vector<2x128xf32>
    %55 = vector.shape_cast %52 : vector<2x128xf32> to vector<1x1x1x2x128xf32>
    tpu.vector_store %arg4[%c0_44, %c0_45, %c3_46, %c0_47, %c0_48], %55 {strides = array<i32>} : memref<1x3x6x2x128xf32, #tpu.memory_space<vmem>>, vector<1x1x1x2x128xf32>,
    %c0_49 = arith.constant 0 : index
    %c1_50 = arith.constant 1 : index
    %c0_51 = arith.constant 0 : index
    %c0_52 = arith.constant 0 : index
    %c0_53 = arith.constant 0 : index
    %56 = vector.load %arg3[%c0_49, %c1_50, %c0_51, %c0_52, %c0_53] : memref<1x3x6x2x128xf32, #tpu.memory_space<vmem>>, vector<1x1x1x2x128xf32>
    %57 = vector.shape_cast %56 : vector<1x1x1x2x128xf32> to vector<2x128xf32>
    %c0_54 = arith.constant 0 : index
    %c1_55 = arith.constant 1 : index
    %c1_56 = arith.constant 1 : index
    %c0_57 = arith.constant 0 : index
    %c0_58 = arith.constant 0 : index
    %58 = vector.load %arg3[%c0_54, %c1_55, %c1_56, %c0_57, %c0_58] : memref<1x3x6x2x128xf32, #tpu.memory_space<vmem>>, vector<1x1x1x2x128xf32>
    %59 = vector.shape_cast %58 : vector<1x1x1x2x128xf32> to vector<2x128xf32>
    %c0_59 = arith.constant 0 : index
    %c1_60 = arith.constant 1 : index
    %c2_61 = arith.constant 2 : index
    %c0_62 = arith.constant 0 : index
    %c0_63 = arith.constant 0 : index
    %60 = vector.load %arg3[%c0_59, %c1_60, %c2_61, %c0_62, %c0_63] : memref<1x3x6x2x128xf32, #tpu.memory_space<vmem>>, vector<1x1x1x2x128xf32>
    %61 = vector.shape_cast %60 : vector<1x1x1x2x128xf32> to vector<2x128xf32>
    %c0_64 = arith.constant 0 : index
    %c1_65 = arith.constant 1 : index
    %c3_66 = arith.constant 3 : index
    %c0_67 = arith.constant 0 : index
    %c0_68 = arith.constant 0 : index
    %62 = vector.load %arg3[%c0_64, %c1_65, %c3_66, %c0_67, %c0_68] : memref<1x3x6x2x128xf32, #tpu.memory_space<vmem>>, vector<1x1x1x2x128xf32>
    %63 = vector.shape_cast %62 : vector<1x1x1x2x128xf32> to vector<2x128xf32>
    %64 = arith.negf %57 : vector<2x128xf32>
    %65 = math.exp %64 : vector<2x128xf32>
    %cst_69 = arith.constant 1.000000e+00 : f32
    %66 = vector.broadcast %cst_69 : f32 to vector<2x128xf32>
    %67 = arith.addf %66, %65 : vector<2x128xf32>
    %68 = arith.divf %66, %67 : vector<2x128xf32>
    %cst_70 = arith.constant 1.600000e+01 : f32
    %69 = vector.broadcast %cst_70 : f32 to vector<2x128xf32>
    %70 = arith.mulf %68, %69 : vector<2x128xf32>
    %71 = arith.addf %70, %1 : vector<2x128xf32>
    %c0_71 = arith.constant 0 : index
    %c1_72 = arith.constant 1 : index
    %c0_73 = arith.constant 0 : index
    %c0_74 = arith.constant 0 : index
    %c0_75 = arith.constant 0 : index
    %72 = vector.load %arg4[%c0_71, %c1_72, %c0_73, %c0_74, %c0_75] : memref<1x3x6x2x128xf32, #tpu.memory_space<vmem>>, vector<1x1x1x2x128xf32>
    %73 = vector.shape_cast %72 : vector<1x1x1x2x128xf32> to vector<2x128xf32>
    %74 = vector.shape_cast %71 : vector<2x128xf32> to vector<1x1x1x2x128xf32>
    tpu.vector_store %arg4[%c0_71, %c1_72, %c0_73, %c0_74, %c0_75], %74 {strides = array<i32>} : memref<1x3x6x2x128xf32, #tpu.memory_space<vmem>>, vector<1x1x1x2x128xf32>,
    %75 = arith.negf %59 : vector<2x128xf32>
    %76 = math.exp %75 : vector<2x128xf32>
    %cst_76 = arith.constant 1.000000e+00 : f32
    %77 = vector.broadcast %cst_76 : f32 to vector<2x128xf32>
    %78 = arith.addf %77, %76 : vector<2x128xf32>
    %79 = arith.divf %77, %78 : vector<2x128xf32>
    %cst_77 = arith.constant 1.600000e+01 : f32
    %80 = vector.broadcast %cst_77 : f32 to vector<2x128xf32>
    %81 = arith.mulf %79, %80 : vector<2x128xf32>
    %82 = arith.addf %81, %3 : vector<2x128xf32>
    %c0_78 = arith.constant 0 : index
    %c1_79 = arith.constant 1 : index
    %c1_80 = arith.constant 1 : index
    %c0_81 = arith.constant 0 : index
    %c0_82 = arith.constant 0 : index
    %83 = vector.load %arg4[%c0_78, %c1_79, %c1_80, %c0_81, %c0_82] : memref<1x3x6x2x128xf32, #tpu.memory_space<vmem>>, vector<1x1x1x2x128xf32>
    %84 = vector.shape_cast %83 : vector<1x1x1x2x128xf32> to vector<2x128xf32>
    %85 = vector.shape_cast %82 : vector<2x128xf32> to vector<1x1x1x2x128xf32>
    tpu.vector_store %arg4[%c0_78, %c1_79, %c1_80, %c0_81, %c0_82], %85 {strides = array<i32>} : memref<1x3x6x2x128xf32, #tpu.memory_space<vmem>>, vector<1x1x1x2x128xf32>,
    %86 = arith.negf %61 : vector<2x128xf32>
    %87 = math.exp %86 : vector<2x128xf32>
    %cst_83 = arith.constant 1.000000e+00 : f32
    %88 = vector.broadcast %cst_83 : f32 to vector<2x128xf32>
    %89 = arith.addf %88, %87 : vector<2x128xf32>
    %90 = arith.divf %88, %89 : vector<2x128xf32>
    %91 = arith.negf %63 : vector<2x128xf32>
    %92 = math.exp %91 : vector<2x128xf32>
    %cst_84 = arith.constant 1.000000e+00 : f32
    %93 = vector.broadcast %cst_84 : f32 to vector<2x128xf32>
    %94 = arith.addf %93, %92 : vector<2x128xf32>
    %95 = arith.divf %93, %94 : vector<2x128xf32>
    %96 = arith.mulf %90, %90 : vector<2x128xf32>
    %cst_85 = arith.constant 6.400000e+01 : f32
    %97 = vector.broadcast %cst_85 : f32 to vector<2x128xf32>
    %98 = arith.mulf %96, %97 : vector<2x128xf32>
    %c0_86 = arith.constant 0 : index
    %c1_87 = arith.constant 1 : index
    %c2_88 = arith.constant 2 : index
    %c0_89 = arith.constant 0 : index
    %c0_90 = arith.constant 0 : index
    %99 = vector.load %arg4[%c0_86, %c1_87, %c2_88, %c0_89, %c0_90] : memref<1x3x6x2x128xf32, #tpu.memory_space<vmem>>, vector<1x1x1x2x128xf32>
    %100 = vector.shape_cast %99 : vector<1x1x1x2x128xf32> to vector<2x128xf32>
    %101 = vector.shape_cast %98 : vector<2x128xf32> to vector<1x1x1x2x128xf32>
    tpu.vector_store %arg4[%c0_86, %c1_87, %c2_88, %c0_89, %c0_90], %101 {strides = array<i32>} : memref<1x3x6x2x128xf32, #tpu.memory_space<vmem>>, vector<1x1x1x2x128xf32>,
    %102 = arith.mulf %95, %95 : vector<2x128xf32>
    %cst_91 = arith.constant 1.200000e+02 : f32
    %103 = vector.broadcast %cst_91 : f32 to vector<2x128xf32>
    %104 = arith.mulf %102, %103 : vector<2x128xf32>
    %c0_92 = arith.constant 0 : index
    %c1_93 = arith.constant 1 : index
    %c3_94 = arith.constant 3 : index
    %c0_95 = arith.constant 0 : index
    %c0_96 = arith.constant 0 : index
    %105 = vector.load %arg4[%c0_92, %c1_93, %c3_94, %c0_95, %c0_96] : memref<1x3x6x2x128xf32, #tpu.memory_space<vmem>>, vector<1x1x1x2x128xf32>
    %106 = vector.shape_cast %105 : vector<1x1x1x2x128xf32> to vector<2x128xf32>
    %107 = vector.shape_cast %104 : vector<2x128xf32> to vector<1x1x1x2x128xf32>
    tpu.vector_store %arg4[%c0_92, %c1_93, %c3_94, %c0_95, %c0_96], %107 {strides = array<i32>} : memref<1x3x6x2x128xf32, #tpu.memory_space<vmem>>, vector<1x1x1x2x128xf32>,
    %c0_97 = arith.constant 0 : index
    %c2_98 = arith.constant 2 : index
    %c0_99 = arith.constant 0 : index
    %c0_100 = arith.constant 0 : index
    %c0_101 = arith.constant 0 : index
    %108 = vector.load %arg3[%c0_97, %c2_98, %c0_99, %c0_100, %c0_101] : memref<1x3x6x2x128xf32, #tpu.memory_space<vmem>>, vector<1x1x1x2x128xf32>
    %109 = vector.shape_cast %108 : vector<1x1x1x2x128xf32> to vector<2x128xf32>
    %c0_102 = arith.constant 0 : index
    %c2_103 = arith.constant 2 : index
    %c1_104 = arith.constant 1 : index
    %c0_105 = arith.constant 0 : index
    %c0_106 = arith.constant 0 : index
    %110 = vector.load %arg3[%c0_102, %c2_103, %c1_104, %c0_105, %c0_106] : memref<1x3x6x2x128xf32, #tpu.memory_space<vmem>>, vector<1x1x1x2x128xf32>
    %111 = vector.shape_cast %110 : vector<1x1x1x2x128xf32> to vector<2x128xf32>
    %c0_107 = arith.constant 0 : index
    %c2_108 = arith.constant 2 : index
    %c2_109 = arith.constant 2 : index
    %c0_110 = arith.constant 0 : index
    %c0_111 = arith.constant 0 : index
    %112 = vector.load %arg3[%c0_107, %c2_108, %c2_109, %c0_110, %c0_111] : memref<1x3x6x2x128xf32, #tpu.memory_space<vmem>>, vector<1x1x1x2x128xf32>
    %113 = vector.shape_cast %112 : vector<1x1x1x2x128xf32> to vector<2x128xf32>
    %c0_112 = arith.constant 0 : index
    %c2_113 = arith.constant 2 : index
    %c3_114 = arith.constant 3 : index
    %c0_115 = arith.constant 0 : index
    %c0_116 = arith.constant 0 : index
    %114 = vector.load %arg3[%c0_112, %c2_113, %c3_114, %c0_115, %c0_116] : memref<1x3x6x2x128xf32, #tpu.memory_space<vmem>>, vector<1x1x1x2x128xf32>
    %115 = vector.shape_cast %114 : vector<1x1x1x2x128xf32> to vector<2x128xf32>
    %116 = arith.negf %109 : vector<2x128xf32>
    %117 = math.exp %116 : vector<2x128xf32>
    %cst_117 = arith.constant 1.000000e+00 : f32
    %118 = vector.broadcast %cst_117 : f32 to vector<2x128xf32>
    %119 = arith.addf %118, %117 : vector<2x128xf32>
    %120 = arith.divf %118, %119 : vector<2x128xf32>
    %cst_118 = arith.constant 1.600000e+01 : f32
    %121 = vector.broadcast %cst_118 : f32 to vector<2x128xf32>
    %122 = arith.mulf %120, %121 : vector<2x128xf32>
    %123 = arith.addf %122, %1 : vector<2x128xf32>
    %c0_119 = arith.constant 0 : index
    %c2_120 = arith.constant 2 : index
    %c0_121 = arith.constant 0 : index
    %c0_122 = arith.constant 0 : index
    %c0_123 = arith.constant 0 : index
    %124 = vector.load %arg4[%c0_119, %c2_120, %c0_121, %c0_122, %c0_123] : memref<1x3x6x2x128xf32, #tpu.memory_space<vmem>>, vector<1x1x1x2x128xf32>
    %125 = vector.shape_cast %124 : vector<1x1x1x2x128xf32> to vector<2x128xf32>
    %126 = vector.shape_cast %123 : vector<2x128xf32> to vector<1x1x1x2x128xf32>
    tpu.vector_store %arg4[%c0_119, %c2_120, %c0_121, %c0_122, %c0_123], %126 {strides = array<i32>} : memref<1x3x6x2x128xf32, #tpu.memory_space<vmem>>, vector<1x1x1x2x128xf32>,
    %127 = arith.negf %111 : vector<2x128xf32>
    %128 = math.exp %127 : vector<2x128xf32>
    %cst_124 = arith.constant 1.000000e+00 : f32
    %129 = vector.broadcast %cst_124 : f32 to vector<2x128xf32>
    %130 = arith.addf %129, %128 : vector<2x128xf32>
    %131 = arith.divf %129, %130 : vector<2x128xf32>
    %cst_125 = arith.constant 1.600000e+01 : f32
    %132 = vector.broadcast %cst_125 : f32 to vector<2x128xf32>
    %133 = arith.mulf %131, %132 : vector<2x128xf32>
    %134 = arith.addf %133, %3 : vector<2x128xf32>
    %c0_126 = arith.constant 0 : index
    %c2_127 = arith.constant 2 : index
    %c1_128 = arith.constant 1 : index
    %c0_129 = arith.constant 0 : index
    %c0_130 = arith.constant 0 : index
    %135 = vector.load %arg4[%c0_126, %c2_127, %c1_128, %c0_129, %c0_130] : memref<1x3x6x2x128xf32, #tpu.memory_space<vmem>>, vector<1x1x1x2x128xf32>
    %136 = vector.shape_cast %135 : vector<1x1x1x2x128xf32> to vector<2x128xf32>
    %137 = vector.shape_cast %134 : vector<2x128xf32> to vector<1x1x1x2x128xf32>
    tpu.vector_store %arg4[%c0_126, %c2_127, %c1_128, %c0_129, %c0_130], %137 {strides = array<i32>} : memref<1x3x6x2x128xf32, #tpu.memory_space<vmem>>, vector<1x1x1x2x128xf32>,
    %138 = arith.negf %113 : vector<2x128xf32>
    %139 = math.exp %138 : vector<2x128xf32>
    %cst_131 = arith.constant 1.000000e+00 : f32
    %140 = vector.broadcast %cst_131 : f32 to vector<2x128xf32>
    %141 = arith.addf %140, %139 : vector<2x128xf32>
    %142 = arith.divf %140, %141 : vector<2x128xf32>
    %143 = arith.negf %115 : vector<2x128xf32>
    %144 = math.exp %143 : vector<2x128xf32>
    %cst_132 = arith.constant 1.000000e+00 : f32
    %145 = vector.broadcast %cst_132 : f32 to vector<2x128xf32>
    %146 = arith.addf %145, %144 : vector<2x128xf32>
    %147 = arith.divf %145, %146 : vector<2x128xf32>
    %148 = arith.mulf %142, %142 : vector<2x128xf32>
    %cst_133 = arith.constant 1.320000e+02 : f32
    %149 = vector.broadcast %cst_133 : f32 to vector<2x128xf32>
    %150 = arith.mulf %148, %149 : vector<2x128xf32>
    %c0_134 = arith.constant 0 : index
    %c2_135 = arith.constant 2 : index
    %c2_136 = arith.constant 2 : index
    %c0_137 = arith.constant 0 : index
    %c0_138 = arith.constant 0 : index
    %151 = vector.load %arg4[%c0_134, %c2_135, %c2_136, %c0_137, %c0_138] : memref<1x3x6x2x128xf32, #tpu.memory_space<vmem>>, vector<1x1x1x2x128xf32>
    %152 = vector.shape_cast %151 : vector<1x1x1x2x128xf32> to vector<2x128xf32>
    %153 = vector.shape_cast %150 : vector<2x128xf32> to vector<1x1x1x2x128xf32>
    tpu.vector_store %arg4[%c0_134, %c2_135, %c2_136, %c0_137, %c0_138], %153 {strides = array<i32>} : memref<1x3x6x2x128xf32, #tpu.memory_space<vmem>>, vector<1x1x1x2x128xf32>,
    %154 = arith.mulf %147, %147 : vector<2x128xf32>
    %cst_139 = arith.constant 9.200000e+01 : f32
    %155 = vector.broadcast %cst_139 : f32 to vector<2x128xf32>
    %156 = arith.mulf %154, %155 : vector<2x128xf32>
    %c0_140 = arith.constant 0 : index
    %c2_141 = arith.constant 2 : index
    %c3_142 = arith.constant 3 : index
    %c0_143 = arith.constant 0 : index
    %c0_144 = arith.constant 0 : index
    %157 = vector.load %arg4[%c0_140, %c2_141, %c3_142, %c0_143, %c0_144] : memref<1x3x6x2x128xf32, #tpu.memory_space<vmem>>, vector<1x1x1x2x128xf32>
    %158 = vector.shape_cast %157 : vector<1x1x1x2x128xf32> to vector<2x128xf32>
    %159 = vector.shape_cast %156 : vector<2x128xf32> to vector<1x1x1x2x128xf32>
    tpu.vector_store %arg4[%c0_140, %c2_141, %c3_142, %c0_143, %c0_144], %159 {strides = array<i32>} : memref<1x3x6x2x128xf32, #tpu.memory_space<vmem>>, vector<1x1x1x2x128xf32>,
    %c0_145 = arith.constant 0 : index
    %c0_146 = arith.constant 0 : index
    %c4 = arith.constant 4 : index
    %c0_147 = arith.constant 0 : index
    %c0_148 = arith.constant 0 : index
    %160 = vector.load %arg3[%c0_145, %c0_146, %c4, %c0_147, %c0_148] : memref<1x3x6x2x128xf32, #tpu.memory_space<vmem>>, vector<1x1x1x2x128xf32>
    %161 = vector.shape_cast %160 : vector<1x1x1x2x128xf32> to vector<2x128xf32>
    %c0_149 = arith.constant 0 : index
    %c1_150 = arith.constant 1 : index
    %c4_151 = arith.constant 4 : index
    %c0_152 = arith.constant 0 : index
    %c0_153 = arith.constant 0 : index
    %162 = vector.load %arg3[%c0_149, %c1_150, %c4_151, %c0_152, %c0_153] : memref<1x3x6x2x128xf32, #tpu.memory_space<vmem>>, vector<1x1x1x2x128xf32>
    %163 = vector.shape_cast %162 : vector<1x1x1x2x128xf32> to vector<2x128xf32>
    %c0_154 = arith.constant 0 : index
    %c2_155 = arith.constant 2 : index
    %c4_156 = arith.constant 4 : index
    %c0_157 = arith.constant 0 : index
    %c0_158 = arith.constant 0 : index
    %164 = vector.load %arg3[%c0_154, %c2_155, %c4_156, %c0_157, %c0_158] : memref<1x3x6x2x128xf32, #tpu.memory_space<vmem>>, vector<1x1x1x2x128xf32>
    %165 = vector.shape_cast %164 : vector<1x1x1x2x128xf32> to vector<2x128xf32>
    %166 = arith.maximumf %161, %163 : vector<2x128xf32>
    %167 = arith.maximumf %166, %165 : vector<2x128xf32>
    %168 = arith.subf %161, %167 : vector<2x128xf32>
    %169 = math.exp %168 : vector<2x128xf32>
    %170 = arith.subf %163, %167 : vector<2x128xf32>
    %171 = math.exp %170 : vector<2x128xf32>
    %172 = arith.subf %165, %167 : vector<2x128xf32>
    %173 = math.exp %172 : vector<2x128xf32>
    %174 = arith.addf %169, %171 : vector<2x128xf32>
    %175 = arith.addf %174, %173 : vector<2x128xf32>
    %176 = tpu.reciprocal %175 {approx = true} : vector<2x128xf32> -> vector<2x128xf32>
    %177 = arith.mulf %175, %176 : vector<2x128xf32>
    %cst_159 = arith.constant 2.000000e+00 : f32
    %178 = vector.broadcast %cst_159 : f32 to vector<2x128xf32>
    %179 = arith.subf %178, %177 : vector<2x128xf32>
    %180 = arith.mulf %176, %179 : vector<2x128xf32>
    %181 = arith.mulf %169, %180 : vector<2x128xf32>
    %c0_160 = arith.constant 0 : index
    %c0_161 = arith.constant 0 : index
    %c4_162 = arith.constant 4 : index
    %c0_163 = arith.constant 0 : index
    %c0_164 = arith.constant 0 : index
    %182 = vector.load %arg4[%c0_160, %c0_161, %c4_162, %c0_163, %c0_164] : memref<1x3x6x2x128xf32, #tpu.memory_space<vmem>>, vector<1x1x1x2x128xf32>
    %183 = vector.shape_cast %182 : vector<1x1x1x2x128xf32> to vector<2x128xf32>
    %184 = vector.shape_cast %181 : vector<2x128xf32> to vector<1x1x1x2x128xf32>
    tpu.vector_store %arg4[%c0_160, %c0_161, %c4_162, %c0_163, %c0_164], %184 {strides = array<i32>} : memref<1x3x6x2x128xf32, #tpu.memory_space<vmem>>, vector<1x1x1x2x128xf32>,
    %185 = arith.mulf %171, %180 : vector<2x128xf32>
    %c0_165 = arith.constant 0 : index
    %c1_166 = arith.constant 1 : index
    %c4_167 = arith.constant 4 : index
    %c0_168 = arith.constant 0 : index
    %c0_169 = arith.constant 0 : index
    %186 = vector.load %arg4[%c0_165, %c1_166, %c4_167, %c0_168, %c0_169] : memref<1x3x6x2x128xf32, #tpu.memory_space<vmem>>, vector<1x1x1x2x128xf32>
    %187 = vector.shape_cast %186 : vector<1x1x1x2x128xf32> to vector<2x128xf32>
    %188 = vector.shape_cast %185 : vector<2x128xf32> to vector<1x1x1x2x128xf32>
    tpu.vector_store %arg4[%c0_165, %c1_166, %c4_167, %c0_168, %c0_169], %188 {strides = array<i32>} : memref<1x3x6x2x128xf32, #tpu.memory_space<vmem>>, vector<1x1x1x2x128xf32>,
    %189 = arith.mulf %173, %180 : vector<2x128xf32>
    %c0_170 = arith.constant 0 : index
    %c2_171 = arith.constant 2 : index
    %c4_172 = arith.constant 4 : index
    %c0_173 = arith.constant 0 : index
    %c0_174 = arith.constant 0 : index
    %190 = vector.load %arg4[%c0_170, %c2_171, %c4_172, %c0_173, %c0_174] : memref<1x3x6x2x128xf32, #tpu.memory_space<vmem>>, vector<1x1x1x2x128xf32>
    %191 = vector.shape_cast %190 : vector<1x1x1x2x128xf32> to vector<2x128xf32>
    %192 = vector.shape_cast %189 : vector<2x128xf32> to vector<1x1x1x2x128xf32>
    tpu.vector_store %arg4[%c0_170, %c2_171, %c4_172, %c0_173, %c0_174], %192 {strides = array<i32>} : memref<1x3x6x2x128xf32, #tpu.memory_space<vmem>>, vector<1x1x1x2x128xf32>,
    %c0_175 = arith.constant 0 : index
    %c0_176 = arith.constant 0 : index
    %c5 = arith.constant 5 : index
    %c0_177 = arith.constant 0 : index
    %c0_178 = arith.constant 0 : index
    %193 = vector.load %arg3[%c0_175, %c0_176, %c5, %c0_177, %c0_178] : memref<1x3x6x2x128xf32, #tpu.memory_space<vmem>>, vector<1x1x1x2x128xf32>
    %194 = vector.shape_cast %193 : vector<1x1x1x2x128xf32> to vector<2x128xf32>
    %c0_179 = arith.constant 0 : index
    %c1_180 = arith.constant 1 : index
    %c5_181 = arith.constant 5 : index
    %c0_182 = arith.constant 0 : index
    %c0_183 = arith.constant 0 : index
    %195 = vector.load %arg3[%c0_179, %c1_180, %c5_181, %c0_182, %c0_183] : memref<1x3x6x2x128xf32, #tpu.memory_space<vmem>>, vector<1x1x1x2x128xf32>
    %196 = vector.shape_cast %195 : vector<1x1x1x2x128xf32> to vector<2x128xf32>
    %c0_184 = arith.constant 0 : index
    %c2_185 = arith.constant 2 : index
    %c5_186 = arith.constant 5 : index
    %c0_187 = arith.constant 0 : index
    %c0_188 = arith.constant 0 : index
    %197 = vector.load %arg3[%c0_184, %c2_185, %c5_186, %c0_187, %c0_188] : memref<1x3x6x2x128xf32, #tpu.memory_space<vmem>>, vector<1x1x1x2x128xf32>
    %198 = vector.shape_cast %197 : vector<1x1x1x2x128xf32> to vector<2x128xf32>
    %199 = arith.maximumf %194, %196 : vector<2x128xf32>
    %200 = arith.maximumf %199, %198 : vector<2x128xf32>
    %201 = arith.subf %194, %200 : vector<2x128xf32>
    %202 = math.exp %201 : vector<2x128xf32>
    %203 = arith.subf %196, %200 : vector<2x128xf32>
    %204 = math.exp %203 : vector<2x128xf32>
    %205 = arith.subf %198, %200 : vector<2x128xf32>
    %206 = math.exp %205 : vector<2x128xf32>
    %207 = arith.addf %202, %204 : vector<2x128xf32>
    %208 = arith.addf %207, %206 : vector<2x128xf32>
    %209 = tpu.reciprocal %208 {approx = true} : vector<2x128xf32> -> vector<2x128xf32>
    %210 = arith.mulf %208, %209 : vector<2x128xf32>
    %cst_189 = arith.constant 2.000000e+00 : f32
    %211 = vector.broadcast %cst_189 : f32 to vector<2x128xf32>
    %212 = arith.subf %211, %210 : vector<2x128xf32>
    %213 = arith.mulf %209, %212 : vector<2x128xf32>
    %214 = arith.mulf %202, %213 : vector<2x128xf32>
    %c0_190 = arith.constant 0 : index
    %c0_191 = arith.constant 0 : index
    %c5_192 = arith.constant 5 : index
    %c0_193 = arith.constant 0 : index
    %c0_194 = arith.constant 0 : index
    %215 = vector.load %arg4[%c0_190, %c0_191, %c5_192, %c0_193, %c0_194] : memref<1x3x6x2x128xf32, #tpu.memory_space<vmem>>, vector<1x1x1x2x128xf32>
    %216 = vector.shape_cast %215 : vector<1x1x1x2x128xf32> to vector<2x128xf32>
    %217 = vector.shape_cast %214 : vector<2x128xf32> to vector<1x1x1x2x128xf32>
    tpu.vector_store %arg4[%c0_190, %c0_191, %c5_192, %c0_193, %c0_194], %217 {strides = array<i32>} : memref<1x3x6x2x128xf32, #tpu.memory_space<vmem>>, vector<1x1x1x2x128xf32>,
    %218 = arith.mulf %204, %213 : vector<2x128xf32>
    %c0_195 = arith.constant 0 : index
    %c1_196 = arith.constant 1 : index
    %c5_197 = arith.constant 5 : index
    %c0_198 = arith.constant 0 : index
    %c0_199 = arith.constant 0 : index
    %219 = vector.load %arg4[%c0_195, %c1_196, %c5_197, %c0_198, %c0_199] : memref<1x3x6x2x128xf32, #tpu.memory_space<vmem>>, vector<1x1x1x2x128xf32>
    %220 = vector.shape_cast %219 : vector<1x1x1x2x128xf32> to vector<2x128xf32>
    %221 = vector.shape_cast %218 : vector<2x128xf32> to vector<1x1x1x2x128xf32>
    tpu.vector_store %arg4[%c0_195, %c1_196, %c5_197, %c0_198, %c0_199], %221 {strides = array<i32>} : memref<1x3x6x2x128xf32, #tpu.memory_space<vmem>>, vector<1x1x1x2x128xf32>,
    %222 = arith.mulf %206, %213 : vector<2x128xf32>
    %c0_200 = arith.constant 0 : index
    %c2_201 = arith.constant 2 : index
    %c5_202 = arith.constant 5 : index
    %c0_203 = arith.constant 0 : index
    %c0_204 = arith.constant 0 : index
    %223 = vector.load %arg4[%c0_200, %c2_201, %c5_202, %c0_203, %c0_204] : memref<1x3x6x2x128xf32, #tpu.memory_space<vmem>>, vector<1x1x1x2x128xf32>
    %224 = vector.shape_cast %223 : vector<1x1x1x2x128xf32> to vector<2x128xf32>
    %225 = vector.shape_cast %222 : vector<2x128xf32> to vector<1x1x1x2x128xf32>
    tpu.vector_store %arg4[%c0_200, %c2_201, %c5_202, %c0_203, %c0_204], %225 {strides = array<i32>} : memref<1x3x6x2x128xf32, #tpu.memory_space<vmem>>, vector<1x1x1x2x128xf32>,
    return
  }
  func.func @transform_0(%arg0: i32, %arg1: i32) -> (i32, i32, i32) {
    %c0_i32 = arith.constant 0 : i32
    %c0_i32_0 = arith.constant 0 : i32
    %c0_i32_1 = arith.constant 0 : i32
    return %c0_i32, %arg0, %c0_i32_0 : i32, i32, i32
  }
  func.func @transform_1(%arg0: i32, %arg1: i32) -> (i32, i32, i32, i32, i32) {
    %c0_i32 = arith.constant 0 : i32
    %c0_i32_0 = arith.constant 0 : i32
    %c0_i32_1 = arith.constant 0 : i32
    %c0_i32_2 = arith.constant 0 : i32
    return %arg1, %c0_i32, %c0_i32_0, %arg0, %c0_i32_1 : i32, i32, i32, i32, i32
  }
  func.func @transform_2(%arg0: i32, %arg1: i32) -> (i32, i32, i32, i32, i32) {
    %c0_i32 = arith.constant 0 : i32
    %c0_i32_0 = arith.constant 0 : i32
    %c0_i32_1 = arith.constant 0 : i32
    %c0_i32_2 = arith.constant 0 : i32
    return %arg1, %c0_i32, %c0_i32_0, %arg0, %c0_i32_1 : i32, i32, i32, i32, i32
  }
}

</mosaic_0001>

<bundles_post_ra>
// kernel: tpu_custom_call.1
= control target key start
LH: loop header
LB: loop body
LE: loop exit
PB: predicated region body
PF: predicated region fallthrough
CT: control target
= control target key end

     0   :  { %7 = vsyncpa [#allocation3], 0  ;;  %s1527_s0 = inlined_call_operand.hbm [shape: f32[2,2,128], index: 0, kind: input, shape index: {}]   ;;  %s1528_s1 = inlined_call_operand.hbm [shape: f32[2,3,6,2,128], index: 1, kind: input, shape index: {}]   ;;  %s1529_s2 = inlined_call_operand.hbm [shape: f32[2,3,6,2,128], index: 2, kind: output, shape index: {}]  }
   0x1   :  { %8 = vsyncpa [#allocation6], 0 }
   0x2   :  { %10 = vsyncpa [#allocation6 + $0x1], 0 }
   0x3   :  { %11 = vsyncpa [#allocation4], 0 }
   0x4   :  { %13 = vsyncpa [#allocation4 + $0x1], 0  ;;  %s1056_s9 = smov 0   ;;  %s1058_s10 = smov 0  }
   0x5   :  { %s1060_s11 = smov 0   ;;  %s1062_s12 = smov 0  }
   0x6   :  { %s1064_s13 = smov 0   ;;  %s1066_s14 = smov 0  }
   0x7 LB: > { %s686_s15 = sadd.s32 4294967295, %s1034_s14   ;;  %s687_s16 = sadd.s32 4294967294, %s1034_s14   ;;  %s1034_s14 = sphi %s1066_s14, %s19_s14   ;;  %s1030_s13 = sphi %s1064_s13, %s1585_s13   ;;  %s1026_s12 = sphi %s1062_s12, %s1584_s12   ;;  %s1022_s11 = sphi %s1060_s11, %s1583_s11   ;;  %s1018_s10 = sphi %s1058_s10, %s1582_s10   ;;  %s1014_s9 = sphi %s1056_s9, %s1581_s9  }
   0x8   : > { %p79_p0 = scmp.ne.s32.totalorder %s1018_s10, %s1014_s9  ;;  %p1090_p1 = scmp.eq.s32.totalorder %s686_s15, 0 }
   0x9   : > { %p1094_p2 = scmp.eq.s32.totalorder %s686_s15, 1  ;;  %p111_p3 = scmp.eq.s32.totalorder %s687_s16, 1 }
   0xa   : > { %p1100_p4 = por %p1090_p1, %p79_p0  ;;  %p688_p5 = scmp.ge.s32.totalorder %s1034_s14, 1 }
   0xb   : > { %p1105_p6 = por %p111_p3, %p79_p0  ;;  %p118_p7 = scmp.lt.s32.totalorder %s1034_s14, 3 }
   0xc   : > { %s131_s23 = sshll.u32 %s1527_s0, 4  ;;  %s1036_s25 = smov [#allocation2]   ;;  %s132_s23 = int_to_ptr.hbm [resolvable:$true] %s131_s23 }
   0xd   : > { %p1113_p8 = pnand %p688_p5, %p118_p7  ;;  %s133_s26 = sshll.u32 %s1036_s25, 4  ;;  %s134_s26 = int_to_ptr.vmem [resolvable:$true] %s133_s26 }
   0xe   : > { %p690_p11 = scmp.ge.s32.totalorder %s1034_s14, 2  ;;  %s1037_s27 = smov 32  }
   0xf   : > { %p755_p9 = pneg %p1113_p8  ;;  %s1038_s28 = smov 2  }
  0x10   : > { %s28_s29 = sadd.s32 1, %s1030_s13  ;;  %s66_s30 = sadd.s32 1, %s1022_s11 }
  0x11   : > { %p756_p10 = pnand %p755_p9, %p1090_p1  ;;  %p29_p12 = scmp.ge.s32.totalorder %s28_s29, 2 }
  0x12   : > { %p73_p13 = scmp.ne.s32.totalorder %s1022_s11, %s1018_s10  ;;  %p74_p0 = scmp.eq.s32.totalorder %s1034_s14, 0 }
  0x13   : > { %758 = dma.hbm_to_vmem [thread:$0]  (!%p756_p10), %s132_s23, 64, %s134_s26, [#allocation3], %s1037_s27, %s1037_s27, %s1038_s28  }
  0x14   : > { %s1587_s29 = smov (%p29_p12, %s28_s29), 0  ;;  %p75_p3 = por %p74_p0, %p73_p13 }
  0x15   : > { %p1134_p5 = por %p1094_p2, %p73_p13  ;;  %s61_s4 = ssub.s32 %s1030_s13, %s1587_s29 }
  0x16   : > { %p768_p7 = scmp.lt.s32.totalorder %s1034_s14, 2  ;;  %p64_p9 = scmp.eq.s32.totalorder %s61_s4, 0 }
  0x17   : > { %s147_s5 = sand.u32 1, %s1022_s11   ;;  %s744_s8 = smul.u32 36, %s1030_s13 }
  0x18   : > { %s743_s6 = smul.u32 36, %s147_s5  ;;  %p760_p10 = pnand %p768_p7, %p75_p3 }
  0x19   : > { %s1143_s7 = scalar_select %p64_p9, %s1022_s11, %s66_s30  }
  0x1a   : > { %s151_s15 = scalar_lea.vmem [#allocation5], %s743_s6  ;;  %s157_s23 = scalar_lea.hbm %s1528_s1, %s744_s8 }
  0x1b   : > { %s160_s16 = sshll.u32 %s151_s15, 4  ;;  %s158_s18 = sshll.u32 %s157_s23, 4  ;;  %s161_s16 = int_to_ptr.vmem [resolvable:$true] %s160_s16  ;;  %s159_s18 = int_to_ptr.hbm [resolvable:$true] %s158_s18 }
  0x1c   : > { %s148_s25 = scalar_lea.sflag [#allocation6], %s147_s5  ;;  %172 = sbr.rel (%p1113_p8) target bundleno = 128 (0x80), region = 28 }
  0x1d   : > { %762 = dma.hbm_to_vmem [thread:$0]  (!%p760_p10), %s159_s18, 576, %s161_s16, %s148_s25, %s1037_s27, %s1037_s27, %s1038_s28  }
  0x21   : > { %1001 = dma.done.wait (%p1090_p1), [#allocation3], 64  }
  0x22   : > { %1003 = vsyncadd (%p1090_p1), [#allocation3], 4294967232  ;;  %s1159_s26 = sand.u32 1, %s1018_s10  }
  0x23   : > { %s745_s30 = smul.u32 36, %s1159_s26  ;;  %s180_s4 = scalar_lea.sflag [#allocation6], %s1159_s26 }
  0x25   : > { %s1165_s27 = scalar_lea.vmem [#allocation5], %s745_s30 }
  0x26   : > { %1005 = dma.done.wait (%p1100_p4), %s180_s4, 576  }
  0x27   : > { %1007 = vsyncadd (%p1100_p4), %s180_s4, 4294966720  ;;  %v208_v0 = vld [vmem:[%s1165_s27] sm:$0x3]  ;;  %v694_v2 = vld [vmem:[%s1165_s27 + $0x2] sm:$0x3]  ;;  %s1324_s17 = scalar_lea.vmem [#allocation7], %s745_s30 }
  0x28   : > { %v697_v1 = vmul.f32 -1.442695, %v208_v0  ;;  %v695_v3 = vld [vmem:[%s1165_s27 + $0x4] sm:$0x3]  ;;  %v698_v4 = vmul.f32 -1.442695, %v694_v2 }
  0x29   : > { %v700_v5 = vmul.f32 -1.442695, %v695_v3  ;;  %v696_v6 = vld [vmem:[%s1165_s27 + $0x6] sm:$0x3]  ;;  %v704_v8 = vld [vmem:[%s1165_s27 + $0xc] sm:$0x3] }
  0x2a   : > { %824 = vpow2.f32 %v697_v1  ;;  %v701_v7 = vmul.f32 -1.442695, %v696_v6  ;;  %v705_v9 = vld [vmem:[%s1165_s27 + $0xe] sm:$0x3]  ;;  %v708_v10 = vmul.f32 -1.442695, %v704_v8 }
  0x2b   : > { %826 = vpow2.f32 %v698_v4  ;;  %v710_v11 = vmul.f32 -1.442695, %v705_v9  ;;  %v706_v12 = vld [vmem:[%s1165_s27 + $0x10] sm:$0x3]  ;;  %v707_v13 = vld [vmem:[%s1165_s27 + $0x12] sm:$0x3] }
  0x2c   : > { %828 = vpow2.f32 %v700_v5  ;;  %v712_v14 = vmul.f32 -1.442695, %v706_v12  ;;  %v713_v15 = vmul.f32 -1.442695, %v707_v13  ;;  %v716_v16 = vld [vmem:[%s1165_s27 + $0x18] sm:$0x3] }
  0x2d   : > { %830 = vpow2.f32 %v701_v7  ;;  %v717_v20 = vld [vmem:[%s1165_s27 + $0x1a] sm:$0x3]  ;;  %v720_v23 = vmul.f32 -1.442695, %v716_v16  ;;  %v718_v26 = vld [vmem:[%s1165_s27 + $0x1c] sm:$0x3] }
  0x2e   : > { %832 = vpow2.f32 %v708_v10  ;;  %v1190_v29 = vmul.f32 -1.442695, %v717_v20  ;;  %v1201_v36 = vmul.f32 -1.442695, %v718_v26  ;;  %s746_s19 = smul.u32 36, %s1026_s12  ;;  %s584_s6 = sshll.u32 %s1324_s17, 4  ;;  %s585_s6 = int_to_ptr.vmem [resolvable:$true] %s584_s6 }
  0x2f   : > { %834 = vpow2.f32 %v710_v11  ;;  %s571_s12 = scalar_lea.sflag [#allocation4], %s1159_s26  ;;  %s968_s23 = scalar_lea.hbm %s1529_s2, 72 }
  0x30   : > { %v825_v17 = vpop.eup %824  ;;  %836 = vpow2.f32 %v712_v14  ;;  %s583_s5 = scalar_lea.hbm %s1529_s2, %s746_s19 }
  0x31   : > { %v827_v18 = vpop.eup %826  ;;  %v1180_v19 = vadd.f32 1.0, %v825_v17  ;;  %838 = vpow2.f32 %v713_v15  ;;  %v1373_v15 = vld [vmem:[%s1165_s27 + $0x16] sm:$0x3]  ;;  %s586_s8 = sshll.u32 %s583_s5, 4  ;;  %s587_s8 = int_to_ptr.hbm [resolvable:$true] %s586_s8 }
  0x32   : > { %v829_v21 = vpop.eup %828  ;;  %v1183_v22 = vadd.f32 1.0, %v827_v18  ;;  %s962_s15 = sshra.s32 %s587_s8, 4  ;;  %s963_s15 = int_to_ptr.hbm [resolvable:$true] %s962_s15 }
  0x33   : > { %v831_v24 = vpop.eup %830  ;;  %840 = vrcp.f32 %v1180_v19  ;;  %v230_v25 = vand.u32 2147483648, %v1180_v19  ;;  %v228_v28 = vand.u32 2147483647, %v1180_v19  ;;  %v1194_v33 = vadd.f32 1.0, %v829_v21  ;;  %s964_s16 = scalar_lea.hbm %s963_s15, 36  ;;  %p969_p8 = scmp.lt.s32.totalorder %s963_s15, %s1529_s2 }
  0x34   : > { %v833_v27 = vpop.eup %832  ;;  %842 = vrcp.f32 %v1183_v22  ;;  %v250_v31 = vand.u32 2147483647, %v1183_v22  ;;  %v252_v32 = vand.u32 2147483648, %v1183_v22  ;;  %v1196_v34 = vadd.f32 1.0, %v831_v24  ;;  %p965_p1 = scmp.ne.s32.totalorder %s963_s15, %s964_s16  ;;  %p970_p12 = scmp.lt.s32.totalorder %s968_s23, %s964_s16 }
  0x35   : > { %v835_v30 = vpop.eup %834  ;;  %vm224_vm0 = vweird.f32 %v1180_v19  ;;  %v1199_v35 = vadd.f32 1.0, %v833_v27  ;;  %844 = vpow2.f32 %v720_v23  ;;  %v1203_v38 = vor.u32 1.1754944e-38, %v230_v25 }
  0x36   : > { %v837_v37 = vpop.eup %836  ;;  %vm246_vm1 = vweird.f32 %v1183_v22  ;;  %846 = vrcp.f32 %v1194_v33  ;;  %v275_v39 = vand.u32 2147483648, %v1194_v33  ;;  %vm1208_vm2 = vcmp.eq.f32.partialorder %v228_v28, 8.507059e+37  ;;  %p966_p2 = pnand %p965_p1, %p1134_p5  ;;  %p971_p13 = por %p970_p12, %p969_p8 }
  0x37   : > { %v839_v40 = vpop.eup %838  ;;  %v273_v42 = vand.u32 2147483647, %v1194_v33  ;;  %848 = vrcp.f32 %v1196_v34  ;;  %v294_v43 = vand.u32 2147483648, %v1196_v34  ;;  %v1215_v44 = vadd.f32 1.0, %v835_v30  ;;  %v1294_v30 = vld [vmem:[#allocation2 + $0x2] sm:$0x3] }
  0x38   : > { %vm1217_vm3 = vcmp.eq.f32.partialorder %v250_v31, 8.507059e+37  ;;  %v253_v47 = vor.u32 1.1754944e-38, %v252_v32  ;;  %v292_v48 = vand.u32 2147483647, %v1196_v34  ;;  %850 = vrcp.f32 %v1199_v35  ;;  %p967_p4 = pneg %p966_p2 }
  0x39   : > { %v841_v45 = vpop.eup %840  ;;  %vm269_vm4 = vweird.f32 %v1194_v33  ;;  %v1225_v51 = vor.u32 1.1754944e-38, %v275_v39  ;;  %vm288_vm5 = vweird.f32 %v1196_v34  ;;  %vm323_vm6 = vweird.f32 %v1199_v35 }
  0x3a   : > { %v843_v49 = vpop.eup %842  ;;  %v220_v50 = vmul.f32 %v841_v45, %v1180_v19  ;;  %v327_v53 = vand.u32 2147483647, %v1199_v35  ;;  %v329_v54 = vand.u32 2147483648, %v1199_v35  ;;  %vm225_vm7 = vweird.f32 %v841_v45  ;;  %p972_p0 = pnand %p971_p13, %p967_p4 }
  0x3b   : > { %v242_v52 = vmul.f32 %v843_v49, %v1183_v22  ;;  %v1232_v55 = vpop.eup %844  ;;  %vm1234_vm8 = vcmp.eq.f32.partialorder %v273_v42, 8.507059e+37  ;;  %v1238_v58 = vor.u32 1.1754944e-38, %v294_v43  ;;  %852 = vrcp.f32 %v1215_v44  ;;  %vm1255_vm13 = vmor %vm224_vm0, %vm225_vm7  ;;  %v1279_v22 = vld [vmem:[#allocation2] sm:$0x3] }
  0x3c   : > { %v221_v56 = vsub.f32 1.0, %v220_v50  ;;  %v847_v59 = vpop.eup %846  ;;  %vm247_vm9 = vweird.f32 %v843_v49  ;;  %vm1241_vm10 = vcmp.eq.f32.partialorder %v292_v48, 8.507059e+37  ;;  %v350_v62 = vand.u32 2147483647, %v1215_v44 }
  0x3d   : > { %v243_v60 = vsub.f32 1.0, %v242_v52  ;;  %v849_v63 = vpop.eup %848  ;;  %v265_v1 = vmul.f32 %v847_v59, %v1194_v33  ;;  %vm1248_vm12 = vcmp.eq.f32.partialorder %v327_v53, 8.507059e+37  ;;  %v330_v3 = vor.u32 1.1754944e-38, %v329_v54  ;;  %vm1264_vm15 = vmor %vm246_vm1, %vm247_vm9  ;;  %v728_v53 = vld [vmem:[%s1165_s27 + $0x8] sm:$0x3] }
  0x3e   : > { %v222_v0 = vmul.f32 %v841_v45, %v221_v56  ;;  %v851_v4 = vpop.eup %850  ;;  %vm270_vm14 = vweird.f32 %v847_v59  ;;  %v284_v7 = vmul.f32 %v849_v63, %v1196_v34  ;;  %v352_v8 = vand.u32 2147483648, %v1215_v44  ;;  %v729_v54 = vld [vmem:[%s1165_s27 + $0x14] sm:$0x3]  ;;  %v736_v33 = vld [vmem:[%s1165_s27 + $0x22] sm:$0x3] }
  0x3f   : > { %v244_v6 = vmul.f32 %v843_v49, %v243_v60  ;;  %v266_v11 = vsub.f32 1.0, %v265_v1  ;;  %vm289_vm11 = vweird.f32 %v849_v63  ;;  %v319_v12 = vmul.f32 %v851_v4, %v1199_v35  ;;  %vm1289_vm1 = vmor %vm269_vm4, %vm270_vm14  ;;  %v719_v60 = vld [vmem:[%s1165_s27 + $0x1e] sm:$0x3] }
  0x40   : > { %v223_v9 = vadd.f32 %v841_v45, %v222_v0  ;;  %v285_v14 = vsub.f32 1.0, %v284_v7  ;;  %vm324_vm0 = vweird.f32 %v851_v4  ;;  %vm1269_vm7 = vcmp.eq.f32.partialorder %v350_v62, 8.507059e+37 }
  0x41   : > { %v245_v13 = vadd.f32 %v843_v49, %v244_v6  ;;  %v1273_v16 = vadd.f32 1.0, %v837_v37  ;;  %v853_v17 = vpop.eup %852  ;;  %v267_v19 = vmul.f32 %v847_v59, %v266_v11  ;;  %v320_v20 = vsub.f32 1.0, %v319_v12  ;;  %vm1308_vm4 = vmor %vm323_vm6, %vm324_vm0 }
  0x42   : > { %v227_v18 = vsel %vm1255_vm13, %v841_v45, %v223_v9  ;;  %v1277_v21 = vadd.f32 1.0, %v839_v40  ;;  %v286_v26 = vmul.f32 %v849_v63, %v285_v14  ;;  %v342_v27 = vmul.f32 %v853_v17, %v1215_v44  ;;  %v730_v9 = vld [vmem:[%s1165_s27 + $0x20] sm:$0x3]  ;;  %v1370_v14 = vld [vmem:[%s1165_s27 + $0xa] sm:$0x3] }
  0x43   : > { %v232_v23 = vsel %vm1208_vm2, %v1203_v38, %v227_v18  ;;  %v249_v24 = vsel %vm1264_vm15, %v843_v49, %v245_v13  ;;  %v268_v32 = vadd.f32 %v847_v59, %v267_v19  ;;  %vm1301_vm2 = vmor %vm288_vm5, %vm289_vm11  ;;  %v321_v37 = vmul.f32 %v851_v4, %v320_v20 }
  0x44   : > { %v234_v28 = vmul.f32 16.0, %v232_v23  ;;  %v254_v31 = vsel %vm1217_vm3, %v253_v47, %v249_v24  ;;  %v287_v39 = vadd.f32 %v849_v63, %v286_v26  ;;  %v343_v41 = vsub.f32 1.0, %v342_v27 }
  0x45   : > { %v256_v38 = vmul.f32 16.0, %v254_v31  ;;  %vm347_vm3 = vweird.f32 %v853_v17  ;;  %v272_v42 = vsel %vm1289_vm1, %v847_v59, %v268_v32  ;;  %v322_v43 = vadd.f32 %v851_v4, %v321_v37 }
  0x46   : > { %v235_v34 = vadd.f32 %v234_v28, %v1279_v22  ;;  %854 = vrcp.f32 %v1273_v16  ;;  %v277_v35 = vsel %vm1234_vm8, %v1225_v51, %v272_v42  ;;  %v291_v46 = vsel %vm1301_vm2, %v849_v63, %v287_v39 }
  0x47   : > { %v257_v45 = vadd.f32 %v256_v38, %v1294_v30  ;;  %v344_v47 = vmul.f32 %v853_v17, %v343_v41  ;;  %v298_v48 = vmul.f32 %v277_v35, %v277_v35  ;;  %v296_v49 = vsel %vm1241_vm10, %v1238_v58, %v291_v46 }
  0x48   : > { %236 = vst [vmem:[%s1324_s17] sm:$0x3] %v235_v34  ;;  %v326_v50 = vsel %vm1308_vm4, %v851_v4, %v322_v43  ;;  %vm1558_vm5 = vweird.f32 %v1215_v44  ;;  %v353_v52 = vor.u32 1.1754944e-38, %v352_v8  ;;  %v302_v56 = vmul.f32 %v296_v49, %v296_v49 }
  0x49   : > { %vm1334_vm6 = vmor %vm1558_vm5, %vm347_vm3  ;;  %699 = vst [vmem:[%s1324_s17 + $0x2] sm:$0x3] %v257_v45  ;;  %v331_v57 = vsel %vm1248_vm12, %v330_v3, %v326_v50  ;;  %v345_v59 = vadd.f32 %v853_v17, %v344_v47  ;;  %v1344_v58 = vadd.f32 1.0, %v1232_v55  ;;  %v299_v44 = vmul.f32 40.0, %v298_v48 }
  0x4a   : > { %v333_v61 = vmul.f32 16.0, %v331_v57  ;;  %v373_v62 = vand.u32 2147483647, %v1273_v16  ;;  %856 = vrcp.f32 %v1277_v21  ;;  %v303_v63 = vmul.f32 52.0, %v302_v56 }
  0x4b   : > { %v349_v0 = vsel %vm1334_vm6, %v853_v17, %v345_v59  ;;  %v375_v1 = vand.u32 2147483648, %v1273_v16  ;;  %v512_v2 = vmax.f32 %v728_v53, %v729_v54  ;;  %702 = vst [vmem:[%s1324_s17 + $0x4] sm:$0x3] %v299_v44  ;;  %v392_v5 = vand.u32 2147483647, %v1277_v21 }
  0x4c   : > { %v855_v3 = vpop.eup %854  ;;  %v334_v55 = vadd.f32 %v333_v61, %v1279_v22  ;;  %v354_v4 = vsel %vm1269_vm7, %v353_v52, %v349_v0  ;;  %v725_v6 = vmul.f32 -1.442695, %v719_v60  ;;  %703 = vst [vmem:[%s1324_s17 + $0x6] sm:$0x3] %v303_v63  ;;  %vm369_vm8 = vweird.f32 %v1273_v16 }
  0x4d   : > { %v356_v7 = vmul.f32 16.0, %v354_v4  ;;  %v365_v8 = vmul.f32 %v855_v3, %v1273_v16  ;;  %vm1362_vm9 = vcmp.eq.f32.partialorder %v373_v62, 8.507059e+37  ;;  %vm388_vm10 = vweird.f32 %v1277_v21 }
  0x4e   : > { %709 = vst [vmem:[%s1324_s17 + $0xc] sm:$0x3] %v334_v55  ;;  %858 = vrcp.f32 %v1344_v58  ;;  %vm370_vm11 = vweird.f32 %v855_v3  ;;  %v376_v13 = vor.u32 1.1754944e-38, %v375_v1  ;;  %vm1375_vm12 = vcmp.eq.f32.partialorder %v392_v5, 8.507059e+37 }
  0x4f   : > { %v357_v11 = vadd.f32 %v356_v7, %v1294_v30  ;;  %v366_v12 = vsub.f32 1.0, %v365_v8  ;;  %v394_v19 = vand.u32 2147483648, %v1277_v21  ;;  %860 = vpow2.f32 %v1190_v29  ;;  %vm1387_vm14 = vmor %vm369_vm8, %vm370_vm11 }
  0x50   : > { %v857_v17 = vpop.eup %856  ;;  %v513_v20 = vmax.f32 %v512_v2, %v730_v9  ;;  %vm423_vm13 = vweird.f32 %v1344_v58  ;;  %v427_v25 = vand.u32 2147483647, %v1344_v58  ;;  %862 = vpow2.f32 %v1201_v36 }
  0x51   : > { %711 = vst [vmem:[%s1324_s17 + $0xe] sm:$0x3] %v357_v11  ;;  %v367_v23 = vmul.f32 %v855_v3, %v366_v12  ;;  %v384_v24 = vmul.f32 %v857_v17, %v1277_v21  ;;  %v544_v28 = vmax.f32 %v1370_v14, %v1373_v15  ;;  %vm389_vm15 = vweird.f32 %v857_v17 }
  0x52   : > { %v514_v27 = vsub.f32 %v728_v53, %v513_v20  ;;  %v517_v29 = vsub.f32 %v729_v54, %v513_v20  ;;  %864 = vpow2.f32 %v725_v6  ;;  %v395_v38 = vor.u32 1.1754944e-38, %v394_v19  ;;  %vm1403_vm0 = vmor %vm388_vm10, %vm389_vm15 }
  0x53   : > { %v368_v31 = vadd.f32 %v855_v3, %v367_v23  ;;  %v385_v32 = vsub.f32 1.0, %v384_v24  ;;  %v520_v40 = vsub.f32 %v730_v9, %v513_v20  ;;  %v429_v42 = vand.u32 2147483648, %v1344_v58 }
  0x54   : > { %v859_v37 = vpop.eup %858  ;;  %v515_v39 = vmul.f32 1.442695, %v514_v27  ;;  %v518_v16 = vmul.f32 1.442695, %v517_v29  ;;  %v545_v46 = vmax.f32 %v544_v28, %v736_v33  ;;  %vm1407_vm1 = vcmp.eq.f32.partialorder %v427_v25, 8.507059e+37 }
  0x55   : > { %v372_v41 = vsel %vm1387_vm14, %v855_v3, %v368_v31  ;;  %v386_v34 = vmul.f32 %v857_v17, %v385_v32  ;;  %v419_v36 = vmul.f32 %v859_v37, %v1344_v58  ;;  %v861_v43 = vpop.eup %860  ;;  %vm424_vm7 = vweird.f32 %v859_v37 }
  0x56   : > { %v377_v45 = vsel %vm1362_vm9, %v376_v13, %v372_v41  ;;  %866 = vpow2.f32 %v515_v39  ;;  %v440_v50 = vadd.f32 1.0, %v861_v43  ;;  %v863_v51 = vpop.eup %862  ;;  %v521_v53 = vmul.f32 1.442695, %v520_v40  ;;  %vm1418_vm2 = vmor %vm423_vm13, %vm424_vm7 }
  0x57   : > { %v398_v47 = vmul.f32 %v377_v45, %v377_v45  ;;  %v387_v48 = vadd.f32 %v857_v17, %v386_v34  ;;  %v420_v49 = vsub.f32 1.0, %v419_v36  ;;  %868 = vpow2.f32 %v518_v16 }
  0x58   : > { %v865_v21 = vpop.eup %864  ;;  %870 = vrcp.f32 %v440_v50  ;;  %v430_v44 = vor.u32 1.1754944e-38, %v429_v42  ;;  %v546_v61 = vsub.f32 %v1370_v14, %v545_v46  ;;  %v549_v62 = vsub.f32 %v1373_v15, %v545_v46 }
  0x59   : > { %v399_v54 = vmul.f32 64.0, %v398_v47  ;;  %v391_v56 = vsel %vm1403_vm0, %v857_v17, %v387_v48  ;;  %v421_v57 = vmul.f32 %v859_v37, %v420_v49  ;;  %v463_v1 = vadd.f32 1.0, %v863_v51 }
  0x5a   : > { %v396_v59 = vsel %vm1375_vm12, %v395_v38, %v391_v56  ;;  %v1425_v2 = vadd.f32 1.0, %v865_v21  ;;  %872 = vpow2.f32 %v521_v53  ;;  %v552_v58 = vsub.f32 %v736_v33, %v545_v46 }
  0x5b   : > { %714 = vst [vmem:[%s1324_s17 + $0x10] sm:$0x3] %v399_v54  ;;  %v402_v63 = vmul.f32 %v396_v59, %v396_v59  ;;  %v422_v0 = vadd.f32 %v859_v37, %v421_v57  ;;  %874 = vrcp.f32 %v463_v1  ;;  %v547_v7 = vmul.f32 1.442695, %v546_v61 }
  0x5c   : > { %v1427_v3 = vpop.eup %866  ;;  %876 = vrcp.f32 %v1425_v2  ;;  %v550_v8 = vmul.f32 1.442695, %v549_v62  ;;  %v450_v11 = vand.u32 2147483647, %v440_v50  ;;  %v452_v12 = vand.u32 2147483648, %v440_v50 }
  0x5d   : > { %v403_v55 = vmul.f32 120.0, %v402_v63  ;;  %v426_v4 = vsel %vm1418_vm2, %v859_v37, %v422_v0  ;;  %v1431_v5 = vpop.eup %868  ;;  %v553_v14 = vmul.f32 1.442695, %v552_v58  ;;  %vm446_vm4 = vweird.f32 %v440_v50 }
  0x5e   : > { %v431_v6 = vsel %vm1407_vm1, %v430_v44, %v426_v4  ;;  %v871_v9 = vpop.eup %870  ;;  %v523_v17 = vadd.f32 %v1431_v5, %v1427_v3  ;;  %878 = vpow2.f32 %v547_v7  ;;  %vm1443_vm5 = vcmp.eq.f32.partialorder %v450_v11, 8.507059e+37 }
  0x5f   : > { %715 = vst [vmem:[%s1324_s17 + $0x12] sm:$0x3] %v403_v55  ;;  %v433_v10 = vmul.f32 16.0, %v431_v6  ;;  %v442_v13 = vmul.f32 %v871_v9, %v440_v50  ;;  %vm447_vm3 = vweird.f32 %v871_v9  ;;  %v453_v24 = vor.u32 1.1754944e-38, %v452_v12 }
  0x60   : > { %v1440_v18 = vpop.eup %872  ;;  %880 = vpow2.f32 %v550_v8  ;;  %vm469_vm6 = vweird.f32 %v463_v1  ;;  %vm1448_vm8 = vmor %vm446_vm4, %vm447_vm3  ;;  %v473_v28 = vand.u32 2147483647, %v463_v1  ;;  %v475_v31 = vand.u32 2147483648, %v463_v1 }
  0x61   : > { %v434_v15 = vadd.f32 %v433_v10, %v1279_v22  ;;  %v443_v19 = vsub.f32 1.0, %v442_v13  ;;  %v875_v20 = vpop.eup %874  ;;  %v524_v25 = vadd.f32 %v1440_v18, %v523_v17  ;;  %882 = vpow2.f32 %v553_v14 }
  0x62   : > { %v877_v22 = vpop.eup %876  ;;  %v465_v27 = vmul.f32 %v875_v20, %v463_v1  ;;  %vm470_vm9 = vweird.f32 %v875_v20  ;;  %v494_v38 = vand.u32 2147483648, %v1425_v2  ;;  %vm488_vm10 = vweird.f32 %v1425_v2 }
  0x63   : > { %721 = vst [vmem:[%s1324_s17 + $0x18] sm:$0x3] %v434_v15  ;;  %v444_v26 = vmul.f32 %v871_v9, %v443_v19  ;;  %v484_v32 = vmul.f32 %v877_v22, %v1425_v2  ;;  %884 = vrcp.f32 %v524_v25  ;;  %vm489_vm11 = vweird.f32 %v877_v22  ;;  %vm1461_vm12 = vmor %vm469_vm6, %vm470_vm9 }
  0x64   : > { %v466_v37 = vsub.f32 1.0, %v465_v27  ;;  %v492_v16 = vand.u32 2147483647, %v1425_v2  ;;  %v879_v40 = vpop.eup %878  ;;  %vm1465_vm13 = vcmp.eq.f32.partialorder %v473_v28, 8.507059e+37  ;;  %v476_v35 = vor.u32 1.1754944e-38, %v475_v31  ;;  %vm490_vm14 = vmor %vm488_vm10, %vm489_vm11 }
  0x65   : > { %v445_v33 = vadd.f32 %v871_v9, %v444_v26  ;;  %v485_v39 = vsub.f32 1.0, %v484_v32  ;;  %v495_v50 = vor.u32 1.1754944e-38, %v494_v38 }
  0x66   : > { %v467_v34 = vmul.f32 %v875_v20, %v466_v37  ;;  %v881_v36 = vpop.eup %880  ;;  %vm493_vm15 = vcmp.eq.f32.partialorder %v492_v16, 8.507059e+37 }
  0x67   : > { %v449_v41 = vsel %vm1448_vm8, %v871_v9, %v445_v33  ;;  %v486_v46 = vmul.f32 %v877_v22, %v485_v39  ;;  %v883_v47 = vpop.eup %882  ;;  %v555_v51 = vadd.f32 %v881_v36, %v879_v40 }
  0x68   : > { %v454_v42 = vsel %vm1443_vm5, %v453_v24, %v449_v41  ;;  %v468_v49 = vadd.f32 %v875_v20, %v467_v34 }
  0x69   : > { %v456_v48 = vmul.f32 16.0, %v454_v42  ;;  %v885_v52 = vpop.eup %884  ;;  %v487_v53 = vadd.f32 %v877_v22, %v486_v46  ;;  %v556_v57 = vadd.f32 %v883_v47, %v555_v51 }
  0x6a   : > { %v472_v54 = vsel %vm1461_vm12, %v875_v20, %v468_v49  ;;  %v526_v56 = vmul.f32 %v885_v52, %v524_v25 }
  0x6b   : > { %v457_v21 = vadd.f32 %v456_v48, %v1294_v30  ;;  %v477_v59 = vsel %vm1465_vm13, %v476_v35, %v472_v54  ;;  %v491_v60 = vsel %vm490_vm14, %v877_v22, %v487_v53  ;;  %886 = vrcp.f32 %v556_v57 }
  0x6c   : > { %v498_v44 = vmul.f32 %v477_v59, %v477_v59  ;;  %v496_v61 = vsel %vm493_vm15, %v495_v50, %v491_v60  ;;  %v527_v62 = vsub.f32 2.0, %v526_v56 }
  0x6d   : > { %723 = vst [vmem:[%s1324_s17 + $0x1a] sm:$0x3] %v457_v21  ;;  %v502_v30 = vmul.f32 %v496_v61, %v496_v61 }
  0x6e   : > { %v499_v63 = vmul.f32 132.0, %v498_v44  ;;  %v528_v0 = vmul.f32 %v885_v52, %v527_v62 }
  0x6f   : > { %v503_v1 = vmul.f32 92.0, %v502_v30 }
  0x70   : > { %726 = vst [vmem:[%s1324_s17 + $0x1c] sm:$0x3] %v499_v63  ;;  %v529_v2 = vmul.f32 %v1427_v3, %v528_v0  ;;  %v532_v58 = vmul.f32 %v1431_v5, %v528_v0  ;;  %v535_v55 = vmul.f32 %v1440_v18, %v528_v0 }
  0x71   : > { %727 = vst [vmem:[%s1324_s17 + $0x1e] sm:$0x3] %v503_v1  ;;  %v887_v4 = vpop.eup %886 }
  0x72   : > { %731 = vst [vmem:[%s1324_s17 + $0x8] sm:$0x3] %v529_v2  ;;  %v558_v6 = vmul.f32 %v887_v4, %v556_v57 }
  0x73   : > { %732 = vst [vmem:[%s1324_s17 + $0x14] sm:$0x3] %v532_v58 }
  0x74   : > { %733 = vst [vmem:[%s1324_s17 + $0x20] sm:$0x3] %v535_v55  ;;  %v559_v7 = vsub.f32 2.0, %v558_v6 }
  0x76   : > { %v560_v3 = vmul.f32 %v887_v4, %v559_v7 }
  0x78   : > { %v561_v5 = vmul.f32 %v879_v40, %v560_v3  ;;  %v564_v8 = vmul.f32 %v881_v36, %v560_v3  ;;  %v567_v9 = vmul.f32 %v883_v47, %v560_v3 }
  0x7a   : > { %737 = vst [vmem:[%s1324_s17 + $0xa] sm:$0x3] %v561_v5 }
  0x7b   : > { %738 = vst [vmem:[%s1324_s17 + $0x16] sm:$0x3] %v564_v8 }
  0x7c   : > { %739 = vst [vmem:[%s1324_s17 + $0x22] sm:$0x3] %v567_v9 }
  0x7d   : > { %975 = shalt.err (!%p972_p0)
}
  0x7e   : > { %s1039_s26 = smov 32   ;;  %s1040_s30 = smov 2  }
  0x7f   : > { %753 = dma.vmem_to_hbm [thread:$0]  (%p1134_p5), %s585_s6, 576, %s587_s8, %s571_s12, %s1039_s26, %s1039_s26, %s1040_s30  }
  0x80 PF: > { %s601_s4 = sand.u32 1, %s1014_s9   ;;  %p764_p3 = pnand %p690_p11, %p1105_p6 }
  0x81   : > { %s602_s27 = scalar_lea.sflag [#allocation4], %s601_s4 }
  0x82   : > { %p765_p7 = pneg %p764_p3 }
  0x84   : > { %1009 = dma.done.wait (%p765_p7), %s602_s27, 576  }
  0x85   : > { %1011 = vsyncadd (%p765_p7), %s602_s27, 4294966720  ;;  %s19_s14 = sadd.s32 1, %s1034_s14   ;;  %s1581_s9 = smov %s1018_s10 }
  0x86   : > { %p16_p9 = scmp.ge.s32.totalorder %s19_s14, 4   ;;  %s1582_s10 = smov %s1022_s11 }
  0x87   : > { %s1583_s11 = smov %s1143_s7  ;;  %s1584_s12 = smov %s1030_s13 }
  0x88   : > { %s1585_s13 = smov %s1587_s29  ;;  %18 = sbr.rel (!%p16_p9) target bundleno = 7 (0x7), region = 114 }
  0x8d   :  { %608 = vsyncpa [#allocation3], 1 }
  0x8e   :  { %610 = vsyncpa [#allocation3 + $0x1], 1 }
  0x8f   :  { %611 = vsyncpa [#allocation6], 1 }
  0x90   :  { %613 = vsyncpa [#allocation6 + $0x1], 1 }
  0x91   :  { %614 = vsyncpa [#allocation4], 1 }
  0x92   :  { %616 = vsyncpa [#allocation4 + $0x1], 1 }

</bundles_post_ra>
